<compile_context>
chip_gen: v7x
topology: tpu7x:2x2x1
jax: 0.10.0
libtpu: 0.0.40
codegen_flags: <defaults>
</compile_context>

<pallas_src>
import functools

import jax
import jax.numpy as jnp
from jax.experimental import pallas as pl
from jax.experimental.pallas import tpu as pltpu


def _round_up(a, m):
    return (a + m - 1) // m * m


# ------------------------------- Fused kernel --------------------------------

def _fused_cnn_kernel(x_ref, w1_ref, b1_ref, w2_ref, b2_ref, w3_ref, b3_ref,
                      w4_ref, b4_ref, wf_ref, bf_ref, o_ref,
                      *, K, stride, pool, L6, compute_dtype, exact_softmax):
    """One batch tile per grid step.

    Activation layout: (C_pad, W) with sample b's element j living at lane column
    b*S + j*d, where S is the per-sample slot (= input length) and d the current
    dilation.  Conv (any stride) and MaxPool only need contiguous lane-shifted
    views under this layout; columns outside the valid set carry finite garbage
    that never feeds a valid output.
    """
    cd = compute_dtype

    def conv_relu(h, d, w_ref, b_ref):
        # One im2col MXU matmul. taps are contiguous lane slices at offsets k*d.
        W_out = h.shape[1] - (K - 1) * d
        hc = h.astype(cd)
        cols = jnp.concatenate([hc[:, k * d:k * d + W_out] for k in range(K)], axis=0)
        acc = jnp.dot(w_ref[...], cols, preferred_element_type=jnp.float32)
        return jnp.maximum(acc + b_ref[...], 0.0), d * stride      # new dilation = d*stride

    def max_pool(h, d):
        # torch MaxPool1d(pool): pure VPU max of `pool` lane-shifted views.
        W_out = h.shape[1] - (pool - 1) * d
        out = h[:, :W_out]
        for m in range(1, pool):
            out = jnp.maximum(out, h[:, m * d:m * d + W_out])
        return out, d * pool                                       # new dilation = d*pool

    h = x_ref[0]                                                   # (C_in_pad, W0) f32
    d = 1
    h, d = conv_relu(h, d, w1_ref, b1_ref)
    h, d = conv_relu(h, d, w2_ref, b2_ref)
    h, d = max_pool(h, d)
    h, d = conv_relu(h, d, w3_ref, b3_ref)
    h, d = conv_relu(h, d, w4_ref, b4_ref)
    h, d = max_pool(h, d)                                          # (C_pad, Wp), dilation d

    # Flatten + Linear as ONE dilated contraction: cols row = l*C_pad + c, matching the
    # host-side packing of the fc weight.  Valid logits land at lane column b*S.
    W_out = h.shape[1] - (L6 - 1) * d
    hc = h.astype(cd)
    cols = jnp.concatenate([hc[:, l * d:l * d + W_out] for l in range(L6)], axis=0)
    logits = jnp.dot(wf_ref[...], cols, preferred_element_type=jnp.float32) + bf_ref[...]

    # TODO(synk): nn.Dropout(p=0.5) is identity in eval mode; training-mode dropout not implemented.
    m = jnp.max(logits, axis=0, keepdims=True)                     # softmax over classes (sublanes)
    e = jnp.exp(logits - m)
    denom = jnp.sum(e, axis=0, keepdims=True)
    if exact_softmax:
        probs = e / denom
    else:
        probs = e * pl.reciprocal(denom, approx=True)              # EUP slot, ~free

    assert probs.shape[1] == o_ref.shape[2], (probs.shape, o_ref.shape)
    o_ref[0] = probs.astype(o_ref.dtype)


# ------------------------------ Forward wrapper -------------------------------

def cnn_two_deep_blocks_forward(x, prepped, *, kernel_size, stride, pool_size, b_tile=None):
    """x: (N, C_in, L) float32; prepped: output of prepare_params()."""
    N, C_in, L = x.shape
    K, s, p = kernel_size, stride, pool_size
    cd = prepped["w1"].dtype
    C_in_pad = prepped["w1"].shape[1] // K
    num_classes = prepped["bf"].shape[0]

    # ---- static bookkeeping: valid lengths, dilations, total slice shrinkage ----
    def conv_len(l):
        return (l - K) // s + 1

    L3 = conv_len(conv_len(L)) // p
    L6 = conv_len(conv_len(L3)) // p
    assert L6 >= 1, "input too short for this configuration"

    shifts, d = [], 1
    for stage in ("c", "c", "p", "c", "c", "p"):
        if stage == "c":
            shifts.append((K - 1) * d)
            d *= s
        else:
            shifts.append((p - 1) * d)
            d *= p
    shifts.append((L6 - 1) * d)                      # FC taps
    pad_tail = sum(shifts)                           # enough slack for every static slice

    S = L                                            # per-sample lane slot
    if b_tile is None:
        b_tile = max(1, min(N, 256))                 # KiB-scale weights/activations: VMEM is not a constraint
    G = pl.cdiv(N, b_tile)
    N_pad = G * b_tile
    WB = b_tile * S + pad_tail

    # ---- wrapper-side layout plumbing (one transpose/pad, outside the kernel) ----
    x_p = jnp.pad(x.astype(jnp.float32),
                  ((0, N_pad - N), (0, C_in_pad - C_in), (0, 0)))          # pad batch + channels
    x_t = x_p.reshape(G, b_tile, C_in_pad, S).transpose(0, 2, 1, 3).reshape(G, C_in_pad, b_tile * S)
    x_t = jnp.pad(x_t, ((0, 0), (0, 0), (0, pad_tail)))                    # (G, C_in_pad, WB)

    kern = functools.partial(_fused_cnn_kernel, K=K, stride=s, pool=p, L6=L6,
                             compute_dtype=cd,
                             exact_softmax=bool(cd == jnp.float32))

    w_names = ("w1", "b1", "w2", "b2", "w3", "b3", "w4", "b4", "wf", "bf")
    w_specs = [pl.BlockSpec(prepped[n].shape, lambda g: (0, 0)) for n in w_names]

    out = pl.pallas_call(
        kern,
        out_shape=jax.ShapeDtypeStruct((G, num_classes, b_tile * S), jnp.float32),
        grid=(G,),
        in_specs=[pl.BlockSpec((1, C_in_pad, WB), lambda g: (g, 0, 0))] + w_specs,
        out_specs=pl.BlockSpec((1, num_classes, b_tile * S), lambda g: (g, 0, 0)),
        compiler_params=pltpu.CompilerParams(dimension_semantics=("parallel",)),
    )(x_t, *(prepped[n] for n in w_names))

    # Valid per-sample result sits at lane column b*S of each tile; extraction is layout-only.
    probs = out.reshape(G, num_classes, b_tile, S)[..., 0]                 # (G, nc, b_tile)
    return jnp.transpose(probs, (0, 2, 1)).reshape(N_pad, num_classes)[:N]


# ------------------------ One-time parameter repacking ------------------------

def prepare_params(params, compute_dtype=jnp.bfloat16):
    """Host-side, one-time repack (hoisted out of the forward path):
       conv w (C_out, C_in, K)    -> (C_out_pad, K*C_in_pad)   k-major, channels padded to 8
       fc   w (num_cls, C_out*L6) -> (num_cls, L6*C_out_pad)   l-major, channels padded to 8
       biases -> (rows, 1) float32 (accumulation stays f32).
       bf16 operands are the fast path on all generations (v5e/v6e/v7x MXUs are bf16-native)."""
    def conv_w(w):
        C_out, C_in, K = w.shape
        C_in_p, C_out_p = _round_up(C_in, 8), _round_up(C_out, 8)
        wt = jnp.transpose(w, (0, 2, 1))                                   # (C_out, K, C_in)
        wt = jnp.pad(wt, ((0, C_out_p - C_out), (0, 0), (0, C_in_p - C_in)))
        return wt.reshape(C_out_p, K * C_in_p).astype(compute_dtype)

    def conv_b(b):
        C_out_p = _round_up(b.shape[0], 8)
        return jnp.pad(b, (0, C_out_p - b.shape[0])).reshape(-1, 1).astype(jnp.float32)

    wf = params["wf"]                                                      # (num_classes, C_out*L6)
    num_classes, flat_dim = wf.shape
    C_out = params["w4"].shape[0]
    C_out_p = _round_up(C_out, 8)
    L6 = flat_dim // C_out
    wf3 = wf.reshape(num_classes, C_out, L6).transpose(0, 2, 1)            # (nc, L6, C_out)
    wf3 = jnp.pad(wf3, ((0, 0), (0, 0), (0, C_out_p - C_out)))
    return dict(
        w1=conv_w(params["w1"]), b1=conv_b(params["b1"]),
        w2=conv_w(params["w2"]), b2=conv_b(params["b2"]),
        w3=conv_w(params["w3"]), b3=conv_b(params["b3"]),
        w4=conv_w(params["w4"]), b4=conv_b(params["b4"]),
        wf=wf3.reshape(num_classes, L6 * C_out_p).astype(compute_dtype),
        bf=params["bf"].reshape(num_classes, 1).astype(jnp.float32),
    )


# --------------------------- Deterministic params -----------------------------

def init_params(key, num_in, num_out, K, num_classes, flat_dim):
    keys = jax.random.split(key, 10)

    def conv_init(kw, kb, cin, cout):
        bound = 1.0 / (cin * K) ** 0.5
        w = jax.random.uniform(kw, (cout, cin, K), jnp.float32, -bound, bound)
        b = jax.random.uniform(kb, (cout,), jnp.float32, -bound, bound)
        return w, b

    w1, b1 = conv_init(keys[0], keys[1], num_in, num_out)
    w2, b2 = conv_init(keys[2], keys[3], num_out, num_out)
    w3, b3 = conv_init(keys[4], keys[5], num_out, num_out)
    w4, b4 = conv_init(keys[6], keys[7], num_out, num_out)
    bound = 1.0 / flat_dim ** 0.5
    wf = jax.random.uniform(keys[8], (num_classes, flat_dim), jnp.float32, -bound, bound)
    bf = jax.random.uniform(keys[9], (num_classes,), jnp.float32, -bound, bound)
    return dict(w1=w1, b1=b1, w2=w2, b2=b2, w3=w3, b3=b3, w4=w4, b4=b4, wf=wf, bf=bf)


# ------------------------------ Pure-JAX reference ----------------------------

def reference_forward(x, params, stride, pool_size):
    def conv(x, w, b):
        out = jax.lax.conv_general_dilated(
            x, w, window_strides=(stride,), padding="VALID",
            dimension_numbers=("NCH", "OIH", "NCH"))
        return jax.nn.relu(out + b[None, :, None])

    def pool(x):
        N, C, L = x.shape
        L_out = L // pool_size
        return jnp.max(x[:, :, :L_out * pool_size].reshape(N, C, L_out, pool_size), axis=-1)

    x = conv(x, params["w1"], params["b1"])
    x = conv(x, params["w2"], params["b2"])
    x = pool(x)
    x = conv(x, params["w3"], params["b3"])
    x = conv(x, params["w4"], params["b4"])
    x = pool(x)
    flat = x.reshape(x.shape[0], -1)
    logits = flat @ params["wf"].T + params["bf"]
    return jax.nn.softmax(logits, axis=1)


# ----------------------------------- Main -------------------------------------

def _infer_flat_dim(L, K, s, p, num_out):
    def c(l):
        return (l - K) // s + 1
    l = c(c(L)) // p
    l = c(c(l)) // p
    return num_out * l, l


def _run_case(key, num_in, num_out, K, s, p, num_classes, N, L, b_tile,
              f32_check=True):
    flat_dim, L6 = _infer_flat_dim(L, K, s, p, num_out)
    assert L6 >= 1
    kx, kp = jax.random.split(key)
    x = jax.random.normal(kx, (N, num_in, L), jnp.float32)
    params = init_params(kp, num_in, num_out, K, num_classes, flat_dim)
    ref = jax.block_until_ready(reference_forward(x, params, s, p))

    if f32_check:
        # Full-fidelity path (f32 MXU operands, exact softmax): tight check vs. reference.
        p32 = prepare_params(params, jnp.float32)
        out = jax.block_until_ready(cnn_two_deep_blocks_forward(
            x, p32, kernel_size=K, stride=s, pool_size=p, b_tile=b_tile))
        assert out.shape == (N, num_classes)
        assert bool(jnp.allclose(jnp.sum(out, axis=1), 1.0, atol=1e-5)), "softmax rows must sum to 1"
        assert bool(jnp.allclose(out, ref, atol=1e-4, rtol=1e-4)), "Pallas f32 output mismatch vs reference"

    # Fast path (bf16 MXU operands on v5e/v6e/v7x, f32 accumulation, EUP reciprocal): looser tolerance.
    pbf = prepare_params(params, jnp.bfloat16)
    out_bf = jax.block_until_ready(cnn_two_deep_blocks_forward(
        x, pbf, kernel_size=K, stride=s, pool_size=p, b_tile=b_tile))
    assert out_bf.shape == (N, num_classes)
    assert bool(jnp.allclose(jnp.sum(out_bf, axis=1), 1.0, atol=2e-2)), "bf16 softmax rows must sum to ~1"
    assert bool(jnp.allclose(out_bf, ref, atol=5e-2, rtol=5e-2)), "bf16 path diverged too far from reference"


if __name__ == "__main__":
    key = jax.random.PRNGKey(0)
    k1, k2 = jax.random.split(key)

    # Main configuration (stride=1), batch padded to 2 tiles so grid=(2,) exercises megacore sharding.
    _run_case(k1, num_in=4, num_out=8, K=3, s=1, p=2, num_classes=5,
              N=6, L=64, b_tile=4, f32_check=True)

    # stride=2 configuration: same code path (dilation bookkeeping, no strided slices), bf16 only.
    _run_case(k2, num_in=4, num_out=8, K=3, s=2, p=2, num_classes=5,
              N=3, L=256, b_tile=2, f32_check=False)

    print("KERNEL_OK")
</pallas_src>

<mosaic_0001>
module attributes {stable_mosaic.version = 11 : i64} {
  func.func @_fused_cnn_kernel(%arg0: i32, %arg1: memref<1x8x319xf32, #tpu.memory_space<vmem>>, %arg2: memref<8x24xf32, #tpu.memory_space<vmem>>, %arg3: memref<8x1xf32, #tpu.memory_space<vmem>>, %arg4: memref<8x24xf32, #tpu.memory_space<vmem>>, %arg5: memref<8x1xf32, #tpu.memory_space<vmem>>, %arg6: memref<8x24xf32, #tpu.memory_space<vmem>>, %arg7: memref<8x1xf32, #tpu.memory_space<vmem>>, %arg8: memref<8x24xf32, #tpu.memory_space<vmem>>, %arg9: memref<8x1xf32, #tpu.memory_space<vmem>>, %arg10: memref<5x104xf32, #tpu.memory_space<vmem>>, %arg11: memref<5x1xf32, #tpu.memory_space<vmem>>, %arg12: memref<1x5x256xf32, #tpu.memory_space<vmem>>) attributes {dimension_semantics = [#tpu.dimension_semantics<parallel>], iteration_bounds = array<i64: 2>, scalar_prefetch = 0 : i64, scratch_operands = 0 : i64, tpu.core_type = #tpu.core_type<tc>, window_params = [{transform_indices = @transform_0, window_bounds = array<i64: 1, 8, 319>}, {pipeline_mode = #tpu.pipeline_mode<synchronous>, transform_indices = @transform_1, window_bounds = array<i64: 8, 24>}, {pipeline_mode = #tpu.pipeline_mode<synchronous>, transform_indices = @transform_2, window_bounds = array<i64: 8, 1>}, {pipeline_mode = #tpu.pipeline_mode<synchronous>, transform_indices = @transform_3, window_bounds = array<i64: 8, 24>}, {pipeline_mode = #tpu.pipeline_mode<synchronous>, transform_indices = @transform_4, window_bounds = array<i64: 8, 1>}, {pipeline_mode = #tpu.pipeline_mode<synchronous>, transform_indices = @transform_5, window_bounds = array<i64: 8, 24>}, {pipeline_mode = #tpu.pipeline_mode<synchronous>, transform_indices = @transform_6, window_bounds = array<i64: 8, 1>}, {pipeline_mode = #tpu.pipeline_mode<synchronous>, transform_indices = @transform_7, window_bounds = array<i64: 8, 24>}, {pipeline_mode = #tpu.pipeline_mode<synchronous>, transform_indices = @transform_8, window_bounds = array<i64: 8, 1>}, {pipeline_mode = #tpu.pipeline_mode<synchronous>, transform_indices = @transform_9, window_bounds = array<i64: 5, 104>}, {pipeline_mode = #tpu.pipeline_mode<synchronous>, transform_indices = @transform_10, window_bounds = array<i64: 5, 1>}, {transform_indices = @transform_11, window_bounds = array<i64: 1, 5, 256>}]} {
    %c0 = arith.constant 0 : index
    %c0_0 = arith.constant 0 : index
    %c0_1 = arith.constant 0 : index
    %0 = vector.load %arg1[%c0, %c0_0, %c0_1] : memref<1x8x319xf32, #tpu.memory_space<vmem>>, vector<1x8x319xf32>
    %1 = vector.shape_cast %0 : vector<1x8x319xf32> to vector<8x319xf32>
    %2 = vector.extract_strided_slice %1 {offsets = [0, 0], sizes = [8, 317], strides = [1, 1]} : vector<8x319xf32> to vector<8x317xf32>
    %3 = vector.extract_strided_slice %1 {offsets = [0, 1], sizes = [8, 317], strides = [1, 1]} : vector<8x319xf32> to vector<8x317xf32>
    %4 = vector.extract_strided_slice %1 {offsets = [0, 2], sizes = [8, 317], strides = [1, 1]} : vector<8x319xf32> to vector<8x317xf32>
    %5 = tpu.concatenate %2, %3, %4 in 0 : vector<8x317xf32>, vector<8x317xf32>, vector<8x317xf32> -> vector<24x317xf32>
    %c0_2 = arith.constant 0 : index
    %c0_3 = arith.constant 0 : index
    %6 = vector.load %arg2[%c0_2, %c0_3] : memref<8x24xf32, #tpu.memory_space<vmem>>, vector<8x24xf32>
    %cst = arith.constant dense<0.000000e+00> : vector<8x317xf32>
    %7 = tpu.matmul %6, %5, %cst {dimension_numbers = #tpu.dot_dimension_numbers<[1], [0], [0], [1], [0, 0, 1, 1], [], []>} : vector<8x24xf32>, vector<24x317xf32>, vector<8x317xf32> -> vector<8x317xf32>
    %c0_4 = arith.constant 0 : index
    %c0_5 = arith.constant 0 : index
    %8 = vector.load %arg3[%c0_4, %c0_5] : memref<8x1xf32, #tpu.memory_space<vmem>>, vector<8x1xf32>
    %9 = vector.broadcast %8 : vector<8x1xf32> to vector<8x317xf32>
    %10 = arith.addf %7, %9 : vector<8x317xf32>
    %cst_6 = arith.constant 0.000000e+00 : f32
    %11 = vector.broadcast %cst_6 : f32 to vector<8x317xf32>
    %12 = arith.maximumf %10, %11 : vector<8x317xf32>
    %13 = vector.extract_strided_slice %12 {offsets = [0, 0], sizes = [8, 315], strides = [1, 1]} : vector<8x317xf32> to vector<8x315xf32>
    %14 = vector.extract_strided_slice %12 {offsets = [0, 1], sizes = [8, 315], strides = [1, 1]} : vector<8x317xf32> to vector<8x315xf32>
    %15 = vector.extract_strided_slice %12 {offsets = [0, 2], sizes = [8, 315], strides = [1, 1]} : vector<8x317xf32> to vector<8x315xf32>
    %16 = tpu.concatenate %13, %14, %15 in 0 : vector<8x315xf32>, vector<8x315xf32>, vector<8x315xf32> -> vector<24x315xf32>
    %c0_7 = arith.constant 0 : index
    %c0_8 = arith.constant 0 : index
    %17 = vector.load %arg4[%c0_7, %c0_8] : memref<8x24xf32, #tpu.memory_space<vmem>>, vector<8x24xf32>
    %cst_9 = arith.constant dense<0.000000e+00> : vector<8x315xf32>
    %18 = tpu.matmul %17, %16, %cst_9 {dimension_numbers = #tpu.dot_dimension_numbers<[1], [0], [0], [1], [0, 0, 1, 1], [], []>} : vector<8x24xf32>, vector<24x315xf32>, vector<8x315xf32> -> vector<8x315xf32>
    %c0_10 = arith.constant 0 : index
    %c0_11 = arith.constant 0 : index
    %19 = vector.load %arg5[%c0_10, %c0_11] : memref<8x1xf32, #tpu.memory_space<vmem>>, vector<8x1xf32>
    %20 = vector.broadcast %19 : vector<8x1xf32> to vector<8x315xf32>
    %21 = arith.addf %18, %20 : vector<8x315xf32>
    %cst_12 = arith.constant 0.000000e+00 : f32
    %22 = vector.broadcast %cst_12 : f32 to vector<8x315xf32>
    %23 = arith.maximumf %21, %22 : vector<8x315xf32>
    %24 = vector.extract_strided_slice %23 {offsets = [0, 0], sizes = [8, 314], strides = [1, 1]} : vector<8x315xf32> to vector<8x314xf32>
    %25 = vector.extract_strided_slice %23 {offsets = [0, 1], sizes = [8, 314], strides = [1, 1]} : vector<8x315xf32> to vector<8x314xf32>
    %26 = arith.maximumf %24, %25 : vector<8x314xf32>
    %27 = vector.extract_strided_slice %26 {offsets = [0, 0], sizes = [8, 310], strides = [1, 1]} : vector<8x314xf32> to vector<8x310xf32>
    %28 = vector.extract_strided_slice %26 {offsets = [0, 2], sizes = [8, 310], strides = [1, 1]} : vector<8x314xf32> to vector<8x310xf32>
    %29 = vector.extract_strided_slice %26 {offsets = [0, 4], sizes = [8, 310], strides = [1, 1]} : vector<8x314xf32> to vector<8x310xf32>
    %30 = tpu.concatenate %27, %28, %29 in 0 : vector<8x310xf32>, vector<8x310xf32>, vector<8x310xf32> -> vector<24x310xf32>
    %c0_13 = arith.constant 0 : index
    %c0_14 = arith.constant 0 : index
    %31 = vector.load %arg6[%c0_13, %c0_14] : memref<8x24xf32, #tpu.memory_space<vmem>>, vector<8x24xf32>
    %cst_15 = arith.constant dense<0.000000e+00> : vector<8x310xf32>
    %32 = tpu.matmul %31, %30, %cst_15 {dimension_numbers = #tpu.dot_dimension_numbers<[1], [0], [0], [1], [0, 0, 1, 1], [], []>} : vector<8x24xf32>, vector<24x310xf32>, vector<8x310xf32> -> vector<8x310xf32>
    %c0_16 = arith.constant 0 : index
    %c0_17 = arith.constant 0 : index
    %33 = vector.load %arg7[%c0_16, %c0_17] : memref<8x1xf32, #tpu.memory_space<vmem>>, vector<8x1xf32>
    %34 = vector.broadcast %33 : vector<8x1xf32> to vector<8x310xf32>
    %35 = arith.addf %32, %34 : vector<8x310xf32>
    %cst_18 = arith.constant 0.000000e+00 : f32
    %36 = vector.broadcast %cst_18 : f32 to vector<8x310xf32>
    %37 = arith.maximumf %35, %36 : vector<8x310xf32>
    %38 = vector.extract_strided_slice %37 {offsets = [0, 0], sizes = [8, 306], strides = [1, 1]} : vector<8x310xf32> to vector<8x306xf32>
    %39 = vector.extract_strided_slice %37 {offsets = [0, 2], sizes = [8, 306], strides = [1, 1]} : vector<8x310xf32> to vector<8x306xf32>
    %40 = vector.extract_strided_slice %37 {offsets = [0, 4], sizes = [8, 306], strides = [1, 1]} : vector<8x310xf32> to vector<8x306xf32>
    %41 = tpu.concatenate %38, %39, %40 in 0 : vector<8x306xf32>, vector<8x306xf32>, vector<8x306xf32> -> vector<24x306xf32>
    %c0_19 = arith.constant 0 : index
    %c0_20 = arith.constant 0 : index
    %42 = vector.load %arg8[%c0_19, %c0_20] : memref<8x24xf32, #tpu.memory_space<vmem>>, vector<8x24xf32>
    %cst_21 = arith.constant dense<0.000000e+00> : vector<8x306xf32>
    %43 = tpu.matmul %42, %41, %cst_21 {dimension_numbers = #tpu.dot_dimension_numbers<[1], [0], [0], [1], [0, 0, 1, 1], [], []>} : vector<8x24xf32>, vector<24x306xf32>, vector<8x306xf32> -> vector<8x306xf32>
    %c0_22 = arith.constant 0 : index
    %c0_23 = arith.constant 0 : index
    %44 = vector.load %arg9[%c0_22, %c0_23] : memref<8x1xf32, #tpu.memory_space<vmem>>, vector<8x1xf32>
    %45 = vector.broadcast %44 : vector<8x1xf32> to vector<8x306xf32>
    %46 = arith.addf %43, %45 : vector<8x306xf32>
    %cst_24 = arith.constant 0.000000e+00 : f32
    %47 = vector.broadcast %cst_24 : f32 to vector<8x306xf32>
    %48 = arith.maximumf %46, %47 : vector<8x306xf32>
    %49 = vector.extract_strided_slice %48 {offsets = [0, 0], sizes = [8, 304], strides = [1, 1]} : vector<8x306xf32> to vector<8x304xf32>
    %50 = vector.extract_strided_slice %48 {offsets = [0, 2], sizes = [8, 304], strides = [1, 1]} : vector<8x306xf32> to vector<8x304xf32>
    %51 = arith.maximumf %49, %50 : vector<8x304xf32>
    %52 = vector.extract_strided_slice %51 {offsets = [0, 0], sizes = [8, 256], strides = [1, 1]} : vector<8x304xf32> to vector<8x256xf32>
    %53 = vector.extract_strided_slice %51 {offsets = [0, 4], sizes = [8, 256], strides = [1, 1]} : vector<8x304xf32> to vector<8x256xf32>
    %54 = vector.extract_strided_slice %51 {offsets = [0, 8], sizes = [8, 256], strides = [1, 1]} : vector<8x304xf32> to vector<8x256xf32>
    %55 = vector.extract_strided_slice %51 {offsets = [0, 12], sizes = [8, 256], strides = [1, 1]} : vector<8x304xf32> to vector<8x256xf32>
    %56 = vector.extract_strided_slice %51 {offsets = [0, 16], sizes = [8, 256], strides = [1, 1]} : vector<8x304xf32> to vector<8x256xf32>
    %57 = vector.extract_strided_slice %51 {offsets = [0, 20], sizes = [8, 256], strides = [1, 1]} : vector<8x304xf32> to vector<8x256xf32>
    %58 = vector.extract_strided_slice %51 {offsets = [0, 24], sizes = [8, 256], strides = [1, 1]} : vector<8x304xf32> to vector<8x256xf32>
    %59 = vector.extract_strided_slice %51 {offsets = [0, 28], sizes = [8, 256], strides = [1, 1]} : vector<8x304xf32> to vector<8x256xf32>
    %60 = vector.extract_strided_slice %51 {offsets = [0, 32], sizes = [8, 256], strides = [1, 1]} : vector<8x304xf32> to vector<8x256xf32>
    %61 = vector.extract_strided_slice %51 {offsets = [0, 36], sizes = [8, 256], strides = [1, 1]} : vector<8x304xf32> to vector<8x256xf32>
    %62 = vector.extract_strided_slice %51 {offsets = [0, 40], sizes = [8, 256], strides = [1, 1]} : vector<8x304xf32> to vector<8x256xf32>
    %63 = vector.extract_strided_slice %51 {offsets = [0, 44], sizes = [8, 256], strides = [1, 1]} : vector<8x304xf32> to vector<8x256xf32>
    %64 = vector.extract_strided_slice %51 {offsets = [0, 48], sizes = [8, 256], strides = [1, 1]} : vector<8x304xf32> to vector<8x256xf32>
    %65 = tpu.concatenate %52, %53, %54, %55, %56, %57, %58, %59, %60, %61, %62, %63, %64 in 0 : vector<8x256xf32>, vector<8x256xf32>, vector<8x256xf32>, vector<8x256xf32>, vector<8x256xf32>, vector<8x256xf32>, vector<8x256xf32>, vector<8x256xf32>, vector<8x256xf32>, vector<8x256xf32>, vector<8x256xf32>, vector<8x256xf32>, vector<8x256xf32> -> vector<104x256xf32>
    %c0_25 = arith.constant 0 : index
    %c0_26 = arith.constant 0 : index
    %66 = vector.load %arg10[%c0_25, %c0_26] : memref<5x104xf32, #tpu.memory_space<vmem>>, vector<5x104xf32>
    %cst_27 = arith.constant dense<0.000000e+00> : vector<5x256xf32>
    %67 = tpu.matmul %66, %65, %cst_27 {dimension_numbers = #tpu.dot_dimension_numbers<[1], [0], [0], [1], [0, 0, 1, 1], [], []>} : vector<5x104xf32>, vector<104x256xf32>, vector<5x256xf32> -> vector<5x256xf32>
    %c0_28 = arith.constant 0 : index
    %c0_29 = arith.constant 0 : index
    %68 = vector.load %arg11[%c0_28, %c0_29] : memref<5x1xf32, #tpu.memory_space<vmem>>, vector<5x1xf32>
    %69 = vector.broadcast %68 : vector<5x1xf32> to vector<5x256xf32>
    %70 = arith.addf %67, %69 : vector<5x256xf32>
    %cst_30 = arith.constant dense<0xFF800000> : vector<256xf32>
    %71 = vector.multi_reduction <maximumf>, %70, %cst_30 [0] : vector<5x256xf32> to vector<256xf32>
    %72 = vector.shape_cast %71 : vector<256xf32> to vector<1x256xf32>
    %73 = vector.broadcast %72 : vector<1x256xf32> to vector<5x256xf32>
    %74 = arith.subf %70, %73 : vector<5x256xf32>
    %75 = math.exp %74 : vector<5x256xf32>
    %cst_31 = arith.constant dense<0.000000e+00> : vector<256xf32>
    %76 = vector.multi_reduction <add>, %75, %cst_31 [0] : vector<5x256xf32> to vector<256xf32>
    %77 = vector.shape_cast %76 : vector<256xf32> to vector<1x256xf32>
    %78 = vector.broadcast %77 : vector<1x256xf32> to vector<5x256xf32>
    %79 = arith.divf %75, %78 : vector<5x256xf32>
    %c0_32 = arith.constant 0 : index
    %c0_33 = arith.constant 0 : index
    %c0_34 = arith.constant 0 : index
    %80 = vector.load %arg12[%c0_32, %c0_33, %c0_34] : memref<1x5x256xf32, #tpu.memory_space<vmem>>, vector<1x5x256xf32>
    %81 = vector.shape_cast %80 : vector<1x5x256xf32> to vector<5x256xf32>
    %82 = vector.shape_cast %79 : vector<5x256xf32> to vector<1x5x256xf32>
    tpu.vector_store %arg12[%c0_32, %c0_33, %c0_34], %82 {strides = array<i32>} : memref<1x5x256xf32, #tpu.memory_space<vmem>>, vector<1x5x256xf32>,
    return
  }
  func.func @transform_0(%arg0: i32) -> (i32, i32, i32) {
    %c0_i32 = arith.constant 0 : i32
    %c0_i32_0 = arith.constant 0 : i32
    %c0_i32_1 = arith.constant 0 : i32
    return %arg0, %c0_i32, %c0_i32_0 : i32, i32, i32
  }
  func.func @transform_1(%arg0: i32) -> (i32, i32) {
    %c0_i32 = arith.constant 0 : i32
    %c0_i32_0 = arith.constant 0 : i32
    %c0_i32_1 = arith.constant 0 : i32
    return %c0_i32, %c0_i32_0 : i32, i32
  }
  func.func @transform_2(%arg0: i32) -> (i32, i32) {
    %c0_i32 = arith.constant 0 : i32
    %c0_i32_0 = arith.constant 0 : i32
    %c0_i32_1 = arith.constant 0 : i32
    return %c0_i32, %c0_i32_0 : i32, i32
  }
  func.func @transform_3(%arg0: i32) -> (i32, i32) {
    %c0_i32 = arith.constant 0 : i32
    %c0_i32_0 = arith.constant 0 : i32
    %c0_i32_1 = arith.constant 0 : i32
    return %c0_i32, %c0_i32_0 : i32, i32
  }
  func.func @transform_4(%arg0: i32) -> (i32, i32) {
    %c0_i32 = arith.constant 0 : i32
    %c0_i32_0 = arith.constant 0 : i32
    %c0_i32_1 = arith.constant 0 : i32
    return %c0_i32, %c0_i32_0 : i32, i32
  }
  func.func @transform_5(%arg0: i32) -> (i32, i32) {
    %c0_i32 = arith.constant 0 : i32
    %c0_i32_0 = arith.constant 0 : i32
    %c0_i32_1 = arith.constant 0 : i32
    return %c0_i32, %c0_i32_0 : i32, i32
  }
  func.func @transform_6(%arg0: i32) -> (i32, i32) {
    %c0_i32 = arith.constant 0 : i32
    %c0_i32_0 = arith.constant 0 : i32
    %c0_i32_1 = arith.constant 0 : i32
    return %c0_i32, %c0_i32_0 : i32, i32
  }
  func.func @transform_7(%arg0: i32) -> (i32, i32) {
    %c0_i32 = arith.constant 0 : i32
    %c0_i32_0 = arith.constant 0 : i32
    %c0_i32_1 = arith.constant 0 : i32
    return %c0_i32, %c0_i32_0 : i32, i32
  }
  func.func @transform_8(%arg0: i32) -> (i32, i32) {
    %c0_i32 = arith.constant 0 : i32
    %c0_i32_0 = arith.constant 0 : i32
    %c0_i32_1 = arith.constant 0 : i32
    return %c0_i32, %c0_i32_0 : i32, i32
  }
  func.func @transform_9(%arg0: i32) -> (i32, i32) {
    %c0_i32 = arith.constant 0 : i32
    %c0_i32_0 = arith.constant 0 : i32
    %c0_i32_1 = arith.constant 0 : i32
    return %c0_i32, %c0_i32_0 : i32, i32
  }
  func.func @transform_10(%arg0: i32) -> (i32, i32) {
    %c0_i32 = arith.constant 0 : i32
    %c0_i32_0 = arith.constant 0 : i32
    %c0_i32_1 = arith.constant 0 : i32
    return %c0_i32, %c0_i32_0 : i32, i32
  }
  func.func @transform_11(%arg0: i32) -> (i32, i32, i32) {
    %c0_i32 = arith.constant 0 : i32
    %c0_i32_0 = arith.constant 0 : i32
    %c0_i32_1 = arith.constant 0 : i32
    return %arg0, %c0_i32, %c0_i32_0 : i32, i32, i32
  }
}

</mosaic_0001>

<bundles_post_ra>
// kernel: tpu_custom_call.1
= control target key start
LH: loop header
LB: loop body
LE: loop exit
PB: predicated region body
PF: predicated region fallthrough
CT: control target
= control target key end

     0   :  { %16 = vsyncpa [#allocation3], 0  ;;  %s2119_s0 = inlined_call_operand.hbm [shape: f32[2,8,319], index: 0, kind: input, shape index: {}]   ;;  %s2120_s1 = inlined_call_operand.vmem [shape: f32[8,24], index: 1, kind: input, shape index: {}]   ;;  %s2121_s2 = inlined_call_operand.vmem [shape: f32[8,1], index: 2, kind: input, shape index: {}]   ;;  %s2122_s3 = inlined_call_operand.vmem [shape: f32[8,24], index: 3, kind: input, shape index: {}]   ;;  %s2123_s4 = inlined_call_operand.vmem [shape: f32[8,1], index: 4, kind: input, shape index: {}]   ;;  %s2124_s5 = inlined_call_operand.vmem [shape: f32[8,24], index: 5, kind: input, shape index: {}]   ;;  %s2125_s6 = inlined_call_operand.vmem [shape: f32[8,1], index: 6, kind: input, shape index: {}]   ;;  %s2126_s7 = inlined_call_operand.vmem [shape: f32[8,24], index: 7, kind: input, shape index: {}]   ;;  %s2127_s8 = inlined_call_operand.vmem [shape: f32[8,1], index: 8, kind: input, shape index: {}]   ;;  %s2128_s9 = inlined_call_operand.vmem [shape: f32[5,104], index: 9, kind: input, shape index: {}]   ;;  %s2129_s10 = inlined_call_operand.vmem [shape: f32[5,1], index: 10, kind: input, shape index: {}]   ;;  %s2130_s11 = inlined_call_operand.vmem [shape: f32[2,5,256], index: 11, kind: output, shape index: {}]  }
   0x1   :  { %18 = vsyncpa [#allocation3 + $0x1], 0  ;;  %s1898_s17 = smov 0   ;;  %s1900_s18 = smov 0  }
   0x2   :  { %s1902_s19 = smov 0   ;;  %s1904_s20 = smov 0  }
   0x3 LB: > { %s1917_s21 = sadd.s32 4294967295, %s1817_s20   ;;  %s1920_s22 = sadd.s32 1, %s1817_s20   ;;  %s1817_s20 = sphi %s1904_s20, %s2139_s20   ;;  %s1813_s19 = sphi %s1902_s19, %s2138_s19   ;;  %s1809_s18 = sphi %s1900_s18, %s2137_s18   ;;  %s1805_s17 = sphi %s1898_s17, %s2136_s17  }
   0x4   : > { %s28_s23 = ssub.s32 %s1817_s20, %s1920_s22  ;;  %s31_s24 = sadd.s32 1, %s1813_s19 }
   0x5   : > { %p29_p0 = scmp.eq.s32.totalorder %s28_s23, 0  ;;  %p38_p1 = scmp.ne.s32.totalorder %s1813_s19, %s1809_s18 }
   0x6   : > { %p39_p2 = scmp.eq.s32.totalorder %s1817_s20, 0  ;;  %p44_p3 = scmp.ne.s32.totalorder %s1809_s18, %s1805_s17 }
   0x7   : > { %s1930_s25 = scalar_select %p29_p0, %s1813_s19, %s31_s24  }
   0x8   : > { %p40_p4 = por %p39_p2, %p38_p1  ;;  %p45_p5 = scmp.eq.s32.totalorder %s1917_s21, 0 }
   0x9   : > { %2131 = sst [smem:[#allocation5_spill]] %s1930_s25  ;;  %p1617_p6 = scmp.lt.s32.totalorder %s1817_s20, 2 }
   0xa   : > { %p1934_p7 = por %p45_p5, %p44_p3  ;;  %s334_s27 = sand.u32 1, %s1813_s19  }
   0xb   : > { %s1608_s28 = smul.u32 24, %s334_s27  ;;  %p1940_p8 = pnand %p1617_p6, %p40_p4 }
   0xc   : > { %s1609_s29 = smul.u32 384, %s1817_s20  ;;  %s335_s17 = scalar_lea.sflag [#allocation3], %s334_s27 }
   0xd   : > { %s338_s15 = scalar_lea.vmem [#allocation2], %s1608_s28  ;;  %p1755_p11 = pneg %p1940_p8 }
   0xe   : > { %s1948_s14 = scalar_lea.hbm %s2119_s0, %s1609_s29  ;;  %s346_s16 = sshll.u32 %s338_s15, 4  ;;  %s1950_s16 = int_to_ptr.vmem [resolvable:$true] %s346_s16 }
   0xf   : > { %s1753_s23 = scalar_lea.hbm %s1948_s14, 384  ;;  %s1758_s12 = scalar_lea.hbm %s2119_s0, 768 }
  0x10   : > { %p1754_p10 = scmp.ne.s32.totalorder %s1948_s14, %s1753_s23  ;;  %p1759_p0 = scmp.lt.u32.totalorder %s1948_s14, %s2119_s0 }
  0x11   : > { %p1760_p1 = scmp.lt.u32.totalorder %s1758_s12, %s1753_s23  ;;  %p1762_p3 = scmp.lt.u32.totalorder %s1753_s23, %s1948_s14 }
  0x12   : > { %p1756_p12 = pnand %p1755_p11, %p1754_p10 }
  0x13   : > { %p1761_p2 = por %p1760_p1, %p1759_p0 }
  0x14   : > { %p1757_p13 = pneg %p1756_p12 }
  0x15   : > { %p1763_p4 = por %p1762_p3, %p1761_p2 }
  0x17   : > { %p1764_p5 = pnand %p1763_p4, %p1757_p13 }
  0x19   : > { %1767 = shalt.err (!%p1764_p5)
}
  0x1a   : > { %s1768_s27 = scalar_lea.vmem %s1950_s16, 384  ;;  %s1819_s28 = smov [#allocation2]  }
  0x1b   : > { %p1769_p6 = scmp.ne.s32.totalorder %s1950_s16, %s1768_s27  ;;  %s1773_s15 = sshll.u32 %s1819_s28, 4  ;;  %s1774_s15 = int_to_ptr.vmem [resolvable:$false] %s1773_s15 }
  0x1c   : > { %s1775_s25 = scalar_lea.vmem %s1774_s15, 768  ;;  %p1776_p9 = scmp.lt.s32.totalorder %s1950_s16, %s1774_s15 }
  0x1d   : > { %p1771_p10 = pnand %p1769_p6, %p1755_p11  ;;  %p1777_p0 = scmp.lt.s32.totalorder %s1775_s25, %s1768_s27 }
  0x1f   : > { %p1772_p12 = pneg %p1771_p10  ;;  %p1778_p1 = por %p1777_p0, %p1776_p9 }
  0x21   : > { %p1779_p2 = pnand %p1778_p1, %p1772_p12 }
  0x23   : > { %1782 = shalt.err (!%p1779_p2)
}
  0x24   : > { %1616 = dma.hbm_to_vmem [thread:$0]  (!%p1940_p8), %s1948_s14, 384, %s1950_s16, %s335_s17  }
  0x25   : > { %p351_p13 = scmp.lt.s32.totalorder %s1817_s20, 3  ;;  %p2134_p3 = scmp.ge.s32.totalorder %s1817_s20, 1 }
  0x27   : > { %p352_p11 = pnand %p2134_p3, %p351_p13 }
  0x28   : > { %s357_s23 = sand.u32 (!%p352_p11), 1, %s1809_s18  }
  0x29   : > { %355 = sbr.rel (%p352_p11) target bundleno = 2115 (0x843), region = 64  ;;  %s358_s29 = scalar_lea.sflag (!%p352_p11), [#allocation3], %s357_s23 }
  0x2a   : > { %s1610_s24 = smul.u32 (!%p352_p11), 24, %s357_s23 }
  0x2c   : > { %s361_s12 = scalar_lea.vmem (!%p352_p11), [#allocation2], %s1610_s24 }
  0x30   : > { %1800 = dma.done.wait (%p1934_p7), %s358_s29, 384  }
  0x31   : > { %1802 = vsyncadd (%p1934_p7), %s358_s29, 4294966912  ;;  %v406_v0 = vld [vmem:[%s361_s12 + $0x8] sm:$0xff]  ;;  %v407_v1 = vld [vmem:[%s361_s12 + $0x10] sm:$0xff]  ;;  %s1820_s30 = smov 126   ;;  %v1821_v3 = vmov 0.0   ;;  %s1822_s20 = smov 127  }
  0x32   : > { %v1668_v2 = vpack.i.bf16 %v407_v1, %v406_v0  ;;  %425 = vrot.lane.b32.xlu1 %v406_v0, %s1820_s30  ;;  %510 = vmatprep.mubr.f32.mxu1 %v1821_v3  ;;  %v405_v4 = vld [vmem:[%s361_s12] sm:$0xff]  ;;  %v1823_v6 = vmov 0   ;;  %vm417_vm0 = vcmask 1039360   ;;  %vm429_vm1 = vcmask 1031168   ;;  %s1826_s25 = smov 124   ;;  %s1827_s17 = smov 120  }
  0x33   : > { %886 = vmatprep.mubr.f32.mxu0 %v1821_v3  ;;  %v436_v5 = vld [vmem:[%s2121_s2] sm:$0xff]  ;;  %1673 = vset.pattern.permute.xlu1 %v1823_v6  ;;  %vm442_vm2 = vcmask 195584   ;;  %v1824_v22 = vmov 0.0|0.0   ;;  %vm1825_vm3 = vmmov 0   ;;  %vm806_vm4 = vcmask 1014784   ;;  %s1828_s13 = smov 116  }
  0x34   : > { %1669 = vrot.lane.b32.xlu0 %v1668_v2, %s1822_s20  ;;  %v435_v19 = vld [vmem:[%s2120_s1] sm:$0xff]  ;;  %s1830_s27 = smov 108   ;;  %s1831_s28 = smov 104   ;;  %vm1181_vm5 = vcmask 982016   ;;  %vm1192_vm6 = vcmask 949248   ;;  %vm1203_vm7 = vcmask 916480  }
  0x35   : > { %1684 = vset.pattern.permute.xlu0 %v1823_v6  ;;  %v616_v35 = vld [vmem:[%s2123_s4] sm:$0xff]  ;;  %s1832_s15 = smov 100   ;;  %s1833_s23 = smov 96   ;;  %vm1214_vm8 = vcmask 883712   ;;  %vm1225_vm9 = vcmask 850944   ;;  %vm1236_vm10 = vcmask 818176  }
  0x36   : > { %427 = vrot.lane.b32.xlu1 %v407_v1, %s1820_s30  ;;  %v615_v49 = vld [vmem:[%s2122_s3] sm:$0xff]  ;;  %s1835_s24 = smov 88   ;;  %s1836_s29 = smov 84   ;;  %vm1247_vm11 = vcmask 785408   ;;  %vm1258_vm12 = vcmask 752640   ;;  %vm1269_vm13 = vcmask 719872  }
  0x37   : > { %s1837_s12 = smov 80   ;;  %vm1280_vm14 = vcmask 687104   ;;  %vm1291_vm15 = vcmask 654336   ;;  %p400_p7 = scmp.lt.s32.totalorder %s1917_s21, 1 }
  0x38   : > { %411 = vrot.lane.b32.xlu0 %v405_v4, %s1822_s20 }
  0x39   : > { %s2141_s21 = smov (!%p400_p7, %s1917_s21), 1 }
  0x3a   : > { %439 = vperm.xlu1 %1673, %v436_v5  }
  0x3c   : > { %423 = vrot.lane.b32.xlu0 %v405_v4, %s1820_s30 }
  0xa4   : > { %v426_v7 = vpop.permute.xlu1 %425 }
  0xa6   : > { %v1670_v8 = vpop.permute.xlu0 %1669 }
  0xa7   : > { %v1672_v9 = vunpack.i.h.bf16 %v1670_v8  ;;  %v1671_v10 = vunpack.i.l.bf16 %v1670_v8  ;;  %v813_v8 = vld [vmem:[%s2125_s6] sm:$0xff] }
  0xa8   : > { %v428_v15 = vpop.permute.xlu1 %427 }
  0xa9   : > { %v419_v11 = vsel %vm417_vm0, %v1671_v10, %v1672_v9  ;;  %v431_v18 = vsel %vm429_vm1, %v426_v7, %v428_v15  ;;  %v1561_v21 = vpack.c.bf16 %v1672_v9, %v407_v1 }
  0xaa   : > { %v412_v12 = vpop.permute.xlu0 %411  ;;  %v1556_v13 = vpack.c.bf16 %v419_v11, %v406_v0 }
  0xab   : > { %v418_v14 = vsel %vm417_vm0, %v412_v12, %v1671_v10 }
  0xac   : > { %1557 = vmatprep.subr.bf16.mxu1 %v1556_v13  ;;  %v1558_v16 = vpack.c.bf16 %v418_v14, %v405_v4 }
  0xae   : > { %1559 = vmatpush1.bf16.msra.mxu1 %v1558_v16  ;;  %v424_v17 = vpop.permute.xlu0 %423 }
  0xaf   : > { %450 = vmatprep.subr.mxu1 %v431_v18  ;;  %v430_v20 = vsel %vm429_vm1, %v424_v17, %v426_v7 }
  0xb2   : > { %451 = vmatpush1.msra.mxu1 %v430_v20 }
  0xb3   : > { %1492 = vmatmul.mubr.msk.f32.vlgmr.msra.gmra.mrb[0].mxu1 %vm442_vm2, %v435_v19  ;;  %1560 = vmatprep.subr.bf16.mxu1 %v1824_v22 }
  0xb4   : > { %1562 = vmatpush3.bf16.msra.mxu1 %v1561_v21  ;;  %1526 = vmatprep.mubr.msk.f32.mxu1 %vm1825_vm3, %v1821_v3  ;;  %v812_v21 = vld [vmem:[%s2124_s5] sm:$0xff] }
  0xb5   : > { %1524 = vmatprep.subr.mxu1 %v1821_v3 }
  0xb8   : > { %1525 = vmatpush3.msra.mxu1 %v428_v15 }
  0xb9   : > { %1527 = vmatmul.mubr.msk.f32.vlgmr.msra.gmra.mrb[2].mxu1 %vm442_vm2, %v435_v19  ;;  %v440_v23 = vpop.permute.xlu1 %439 }
  0xba   : > { %689 = vmatprep.mubr.f32.mxu1 %v1821_v3 }
 0x186   : > { %v512_v24 = vpop.f32.mrb[0].mxu1 }
 0x187   : > { %v513_v25 = vadd.f32 %v512_v24, %v440_v23  ;;  %v514_v26 = vpop.f32.mrb[1].mxu1 }
 0x188   : > { %v515_v28 = vadd.f32 %v514_v26, %v440_v23 }
 0x189   : > { %v587_v27 = vmax.f32 %v513_v25, 0.0 }
 0x18a   : > { %v588_v32 = vmax.f32 %v515_v28, 0.0 }
 0x18b   : > { %593 = vrot.lane.b32.xlu1 %v587_v27, %s1822_s20 }
 0x18c   : > { %v583_v29 = vpop.f32.mrb[2].mxu1 }
 0x18d   : > { %v584_v30 = vadd.f32 %v583_v29, %v440_v23  ;;  %v1528_v31 = vpop.f32.mrb[3].mxu1 }
 0x18f   : > { %v589_v33 = vmax.f32 %v584_v30, 0.0 }
 0x191   : > { %608 = vrot.lane.b32.xlu1 %v589_v33, %s1820_s30  ;;  %v1674_v34 = vpack.i.bf16 %v589_v33, %v588_v32 }
 0x193   : > { %1675 = vrot.lane.b32.xlu0 %v1674_v34, %s1822_s20 }
 0x195   : > { %619 = vperm.xlu1 %1673, %v616_v35  }
 0x197   : > { %606 = vrot.lane.b32.xlu0 %v588_v32, %s1820_s30 }
 0x19b   : > { %604 = vrot.lane.b32.xlu0 %v587_v27, %s1820_s30 }
 0x1fd   : > { %v594_v36 = vpop.permute.xlu1 %593 }
 0x203   : > { %v609_v45 = vpop.permute.xlu1 %608 }
 0x205   : > { %v1676_v37 = vpop.permute.xlu0 %1675 }
 0x206   : > { %v1678_v38 = vunpack.i.h.bf16 %v1676_v37  ;;  %v1677_v39 = vunpack.i.l.bf16 %v1676_v37 }
 0x208   : > { %v599_v40 = vsel %vm417_vm0, %v594_v36, %v1677_v39  ;;  %v600_v41 = vsel %vm417_vm0, %v1677_v39, %v1678_v38  ;;  %v1568_v50 = vpack.c.bf16 %v1678_v38, %v589_v33  ;;  %v992_v36 = vld [vmem:[%s2127_s8] sm:$0xff] }
 0x209   : > { %v1565_v42 = vpack.c.bf16 %v599_v40, %v587_v27  ;;  %v607_v43 = vpop.permute.xlu0 %606  ;;  %v1563_v44 = vpack.c.bf16 %v600_v41, %v588_v32 }
 0x20a   : > { %v611_v46 = vsel %vm429_vm1, %v607_v43, %v609_v45 }
 0x20b   : > { %1564 = vmatprep.subr.bf16.mxu1 %v1563_v44 }
 0x20c   : > { %1566 = vmatpush1.bf16.msra.mxu1 %v1565_v42 }
 0x20d   : > { %v605_v47 = vpop.permute.xlu0 %604  ;;  %629 = vmatprep.subr.mxu1 %v611_v46 }
 0x20e   : > { %v610_v48 = vsel %vm429_vm1, %v605_v47, %v607_v43  ;;  %v991_v47 = vld [vmem:[%s2126_s7] sm:$0xff] }
 0x210   : > { %630 = vmatpush1.msra.mxu1 %v610_v48 }
 0x211   : > { %1494 = vmatmul.mubr.msk.f32.vlgmr.msra.gmra.mrb[4].mxu1 %vm442_vm2, %v615_v49  ;;  %1567 = vmatprep.subr.bf16.mxu1 %v1824_v22 }
 0x212   : > { %1569 = vmatpush3.bf16.msra.mxu1 %v1568_v50  ;;  %1535 = vmatprep.mubr.msk.f32.mxu1 %vm1825_vm3, %v1821_v3 }
 0x213   : > { %1533 = vmatprep.subr.mxu1 %v1821_v3 }
 0x214   : > { %v620_v52 = vpop.permute.xlu1 %619 }
 0x216   : > { %1534 = vmatpush3.msra.mxu1 %v609_v45 }
 0x217   : > { %1536 = vmatmul.mubr.msk.f32.vlgmr.msra.gmra.mrb[6].mxu1 %vm442_vm2, %v615_v49  ;;  %1574 = vmatprep.subr.bf16.mxu1 %v1824_v22 }
 0x218   : > { %1544 = vmatprep.mubr.msk.f32.mxu1 %vm1825_vm3, %v1821_v3 }
 0x2e4   : > { %v691_v51 = vpop.f32.mrb[4].mxu1 }
 0x2e5   : > { %v693_v53 = vpop.f32.mrb[5].mxu1  ;;  %v692_v55 = vadd.f32 %v691_v51, %v620_v52 }
 0x2e6   : > { %v694_v54 = vadd.f32 %v693_v53, %v620_v52 }
 0x2e7   : > { %v766_v60 = vmax.f32 %v692_v55, 0.0 }
 0x2e8   : > { %v767_v56 = vmax.f32 %v694_v54, 0.0 }
 0x2ea   : > { %v762_v57 = vpop.f32.mrb[6].mxu1  ;;  %774 = vrot.lane.b32.xlu0 %v767_v56, %s1822_s20 }
 0x2eb   : > { %v763_v58 = vadd.f32 %v762_v57, %v620_v52  ;;  %v1537_v59 = vpop.f32.mrb[7].mxu1 }
 0x2ed   : > { %v768_v61 = vmax.f32 %v763_v58, 0.0 }
 0x2ee   : > { %772 = vrot.lane.b32.xlu0 %v766_v60, %s1822_s20 }
 0x2ef   : > { %776 = vrot.lane.b32.xlu1 %v768_v61, %s1822_s20 }
 0x35c   : > { %v775_v62 = vpop.permute.xlu0 %774 }
 0x360   : > { %v773_v63 = vpop.permute.xlu0 %772 }
 0x361   : > { %v778_v0 = vsel %vm417_vm0, %v773_v63, %v775_v62  ;;  %v777_v1 = vpop.permute.xlu1 %776 }
 0x362   : > { %v783_v2 = vmax.f32 %v766_v60, %v778_v0  ;;  %v779_v4 = vsel %vm417_vm0, %v775_v62, %v777_v1  ;;  %v785_v5 = vmax.f32 %v768_v61, %v777_v1  ;;  %vm1377_vm0 = vcmask 1044480  }
 0x363   : > { %v784_v6 = vmax.f32 %v767_v56, %v779_v4 }
 0x364   : > { %789 = vrot.lane.b32.xlu0 %v783_v2, %s1820_s30 }
 0x365   : > { %v1679_v7 = vpack.i.bf16 %v785_v5, %v784_v6 }
 0x367   : > { %1680 = vrot.lane.b32.xlu1 %v1679_v7, %s1820_s30 }
 0x368   : > { %804 = vrot.lane.b32.xlu0 %v785_v5, %s1826_s25 }
 0x36b   : > { %802 = vrot.lane.b32.xlu1 %v784_v6, %s1826_s25 }
 0x36c   : > { %816 = vperm.xlu0 %1684, %v813_v8   ;;  %v1297_v8 = vld [vmem:[%s2129_s10] sm:$0x1f] }
 0x36f   : > { %800 = vrot.lane.b32.xlu1 %v783_v2, %s1826_s25 }
 0x3d6   : > { %v790_v9 = vpop.permute.xlu0 %789 }
 0x3d9   : > { %v1681_v10 = vpop.permute.xlu1 %1680 }
 0x3da   : > { %v1683_v11 = vunpack.i.h.bf16 %v1681_v10  ;;  %v1682_v12 = vunpack.i.l.bf16 %v1681_v10  ;;  %v805_v19 = vpop.permute.xlu0 %804 }
 0x3dc   : > { %v1575_v13 = vpack.c.bf16 %v1683_v11, %v785_v5  ;;  %v796_v14 = vsel %vm429_vm1, %v1682_v12, %v1683_v11  ;;  %v795_v15 = vsel %vm429_vm1, %v790_v9, %v1682_v12 }
 0x3dd   : > { %v803_v16 = vpop.permute.xlu1 %802  ;;  %v1570_v17 = vpack.c.bf16 %v796_v14, %v784_v6  ;;  %v1572_v18 = vpack.c.bf16 %v795_v15, %v783_v2 }
 0x3de   : > { %1576 = vmatpush3.bf16.msra.mxu1 %v1575_v13  ;;  %v808_v20 = vsel %vm806_vm4, %v803_v16, %v805_v19 }
 0x3df   : > { %1571 = vmatprep.subr.bf16.mxu0 %v1570_v17  ;;  %1542 = vmatprep.subr.mxu1 %v1821_v3 }
 0x3e0   : > { %1573 = vmatpush1.bf16.msra.mxu0 %v1572_v18 }
 0x3e1   : > { %v801_v23 = vpop.permute.xlu1 %800  ;;  %826 = vmatprep.subr.mxu0 %v808_v20 }
 0x3e2   : > { %1543 = vmatpush3.msra.mxu1 %v805_v19  ;;  %v807_v24 = vsel %vm806_vm4, %v801_v23, %v803_v16 }
 0x3e3   : > { %1545 = vmatmul.mubr.msk.f32.vlgmr.msra.gmra.mrb[8].mxu1 %vm442_vm2, %v812_v21  ;;  %1581 = vmatprep.subr.bf16.mxu1 %v1824_v22 }
 0x3e4   : > { %827 = vmatpush1.msra.mxu0 %v807_v24  ;;  %1553 = vmatprep.mubr.msk.f32.mxu1 %vm1825_vm3, %v1821_v3 }
 0x3e5   : > { %1496 = vmatmul.mubr.msk.f32.vlgmr.msra.gmra.mrb[0].mxu0 %vm442_vm2, %v812_v21 }
 0x3e6   : > { %1065 = vmatprep.mubr.f32.mxu0 %v1821_v3 }
 0x3eb   : > { %v817_v25 = vpop.permute.xlu0 %816 }
 0x4b6   : > { %v959_v26 = vpop.f32.mrb[8].mxu1 }
 0x4b7   : > { %v960_v27 = vadd.f32 %v959_v26, %v817_v25  ;;  %v1546_v28 = vpop.f32.mrb[9].mxu1 }
 0x4b8   : > { %v888_v29 = vpop.f32.mrb[0].mxu0 }
 0x4b9   : > { %v890_v30 = vpop.f32.mrb[1].mxu0  ;;  %v965_v31 = vmax.f32 %v960_v27, 0.0  ;;  %v889_v33 = vadd.f32 %v888_v29, %v817_v25 }
 0x4ba   : > { %v891_v32 = vadd.f32 %v890_v30, %v817_v25 }
 0x4bb   : > { %v963_v35 = vmax.f32 %v889_v33, 0.0 }
 0x4bc   : > { %v964_v34 = vmax.f32 %v891_v32, 0.0 }
 0x4be   : > { %982 = vrot.lane.b32.xlu0 %v964_v34, %s1826_s25  ;;  %v1685_v22 = vpack.i.bf16 %v965_v31, %v964_v34 }
 0x4c0   : > { %1686 = vrot.lane.b32.xlu1 %v1685_v22, %s1820_s30 }
 0x4c2   : > { %980 = vrot.lane.b32.xlu0 %v963_v35, %s1826_s25 }
 0x4c4   : > { %969 = vrot.lane.b32.xlu1 %v963_v35, %s1820_s30 }
 0x4c8   : > { %984 = vrot.lane.b32.xlu1 %v965_v31, %s1826_s25 }
 0x4cc   : > { %995 = vperm.xlu1 %1673, %v992_v36  }
 0x530   : > { %v983_v40 = vpop.permute.xlu0 %982 }
 0x532   : > { %v1687_v37 = vpop.permute.xlu1 %1686 }
 0x533   : > { %v1689_v38 = vunpack.i.h.bf16 %v1687_v37  ;;  %v1688_v39 = vunpack.i.l.bf16 %v1687_v37 }
 0x534   : > { %v981_v48 = vpop.permute.xlu0 %980 }
 0x535   : > { %v1582_v41 = vpack.c.bf16 %v1689_v38, %v965_v31  ;;  %v976_v42 = vsel %vm429_vm1, %v1688_v39, %v1689_v38  ;;  %v986_v51 = vsel %vm806_vm4, %v981_v48, %v983_v40 }
 0x536   : > { %v970_v43 = vpop.permute.xlu1 %969  ;;  %v1577_v44 = vpack.c.bf16 %v976_v42, %v964_v34 }
 0x537   : > { %v975_v45 = vsel %vm429_vm1, %v970_v43, %v1688_v39  ;;  %1583 = vmatpush3.bf16.msra.mxu1 %v1582_v41 }
 0x538   : > { %v1579_v46 = vpack.c.bf16 %v975_v45, %v963_v35  ;;  %1578 = vmatprep.subr.bf16.mxu0 %v1577_v44  ;;  %1551 = vmatprep.subr.mxu1 %v1821_v3 }
 0x53a   : > { %1580 = vmatpush1.bf16.msra.mxu0 %v1579_v46  ;;  %v985_v49 = vpop.permute.xlu1 %984 }
 0x53b   : > { %1552 = vmatpush3.msra.mxu1 %v985_v49  ;;  %v987_v50 = vsel %vm806_vm4, %v983_v40, %v985_v49 }
 0x53c   : > { %1005 = vmatprep.subr.mxu0 %v987_v50  ;;  %1554 = vmatmul.mubr.msk.f32.vlgmr.msra.gmra.mrb[10].mxu1 %vm442_vm2, %v991_v47 }
 0x53e   : > { %1006 = vmatpush1.msra.mxu0 %v986_v51 }
 0x53f   : > { %1498 = vmatmul.mubr.msk.f32.vlgmr.msra.gmra.mrb[2].mxu0 %vm442_vm2, %v991_v47 }
 0x540   : > { %1370 = vmatprep.mubr.f32.mxu0 %v1821_v3 }
 0x54b   : > { %v996_v52 = vpop.permute.xlu1 %995 }
 0x60f   : > { %v1138_v53 = vpop.f32.mrb[10].mxu1 }
 0x610   : > { %v1139_v54 = vadd.f32 %v1138_v53, %v996_v52  ;;  %v1555_v55 = vpop.f32.mrb[11].mxu1 }
 0x612   : > { %v1144_v56 = vmax.f32 %v1139_v54, 0.0  ;;  %v1067_v57 = vpop.f32.mrb[2].mxu0 }
 0x613   : > { %v1069_v58 = vpop.f32.mrb[3].mxu0  ;;  %v1068_v60 = vadd.f32 %v1067_v57, %v996_v52 }
 0x614   : > { %v1070_v59 = vadd.f32 %v1069_v58, %v996_v52  ;;  %1152 = vrot.lane.b32.xlu1 %v1144_v56, %s1820_s30 }
 0x615   : > { %v1142_v62 = vmax.f32 %v1068_v60, 0.0 }
 0x616   : > { %v1143_v61 = vmax.f32 %v1070_v59, 0.0 }
 0x618   : > { %1150 = vrot.lane.b32.xlu0 %v1143_v61, %s1820_s30 }
 0x61c   : > { %1148 = vrot.lane.b32.xlu0 %v1142_v62, %s1820_s30  ;;  %s1829_s30 = smov 112  }
 0x686   : > { %v1153_v63 = vpop.permute.xlu1 %1152 }
 0x687   : > { %v1161_v1 = vmax.f32 %v1144_v56, %v1153_v63 }
 0x68a   : > { %v1151_v0 = vpop.permute.xlu0 %1150 }
 0x68b   : > { %v1155_v3 = vsel %vm429_vm1, %v1151_v0, %v1153_v63 }
 0x68c   : > { %v1160_v2 = vmax.f32 %v1143_v61, %v1155_v3 }
 0x68e   : > { %v1149_v4 = vpop.permute.xlu0 %1148  ;;  %v1690_v5 = vpack.i.bf16 %v1161_v1, %v1160_v2 }
 0x68f   : > { %v1154_v6 = vsel %vm429_vm1, %v1149_v4, %v1151_v0 }
 0x690   : > { %v1159_v7 = vmax.f32 %v1142_v62, %v1154_v6  ;;  %1691 = vrot.lane.b32.xlu1 %v1690_v5, %s1826_s25 }
 0x692   : > { %1165 = vrot.lane.b32.xlu0 %v1159_v7, %s1826_s25  ;;  %s1834_s25 = smov 92  }
 0x694   : > { %1696 = vrot.lane.b32.xlu1 %v1690_v5, %s1827_s17 }
 0x696   : > { %1701 = vrot.lane.b32.xlu0 %v1690_v5, %s1828_s13 }
 0x698   : > { %1175 = vrot.lane.b32.xlu1 %v1159_v7, %s1827_s17  ;;  %s1503_s17 = sshll.u32 %s2141_s21, 4 }
 0x69a   : > { %1186 = vrot.lane.b32.xlu0 %v1159_v7, %s1828_s13 }
 0x69c   : > { %1706 = vrot.lane.b32.xlu1 %v1690_v5, %s1829_s30 }
 0x69e   : > { %1711 = vrot.lane.b32.xlu0 %v1690_v5, %s1830_s27 }
 0x6a0   : > { %1197 = vrot.lane.b32.xlu1 %v1159_v7, %s1829_s30 }
 0x6a2   : > { %1208 = vrot.lane.b32.xlu0 %v1159_v7, %s1830_s27  ;;  %s404_s27 = scalar_lea.vmem %s2130_s11, %s1503_s17 }
 0x6a4   : > { %1716 = vrot.lane.b32.xlu1 %v1690_v5, %s1831_s28 }
 0x6a6   : > { %1721 = vrot.lane.b32.xlu0 %v1690_v5, %s1832_s15 }
 0x6a8   : > { %1219 = vrot.lane.b32.xlu1 %v1159_v7, %s1831_s28 }
 0x6aa   : > { %1230 = vrot.lane.b32.xlu0 %v1159_v7, %s1832_s15 }
 0x6ac   : > { %1726 = vrot.lane.b32.xlu1 %v1690_v5, %s1833_s23 }
 0x6ae   : > { %1731 = vrot.lane.b32.xlu0 %v1690_v5, %s1834_s25 }
 0x6b0   : > { %1241 = vrot.lane.b32.xlu1 %v1159_v7, %s1833_s23 }
 0x6b2   : > { %1252 = vrot.lane.b32.xlu0 %v1159_v7, %s1834_s25 }
 0x6b4   : > { %1736 = vrot.lane.b32.xlu1 %v1690_v5, %s1835_s24 }
 0x6b6   : > { %1741 = vrot.lane.b32.xlu0 %v1690_v5, %s1836_s29 }
 0x6b8   : > { %1263 = vrot.lane.b32.xlu1 %v1159_v7, %s1835_s24 }
 0x6ba   : > { %1274 = vrot.lane.b32.xlu0 %v1159_v7, %s1836_s29 }
 0x6bc   : > { %1287 = vrot.lane.b32.xlu1 %v1160_v2, %s1837_s12 }
 0x6be   : > { %1289 = vrot.lane.b32.xlu0 %v1161_v1, %s1837_s12 }
 0x6c0   : > { %1285 = vrot.lane.b32.xlu1 %v1159_v7, %s1837_s12 }
 0x6c2   : > { %1300 = vperm.xlu0 %1684, %v1297_v8  }
 0x702   : > { %v1692_v9 = vpop.permute.xlu1 %1691 }
 0x703   : > { %v1694_v10 = vunpack.i.h.bf16 %v1692_v9  ;;  %v1693_v11 = vunpack.i.l.bf16 %v1692_v9 }
 0x704   : > { %v1166_v12 = vpop.permute.xlu0 %1165 }
 0x705   : > { %v1171_v13 = vsel %vm806_vm4, %v1166_v12, %v1693_v11  ;;  %v1172_v14 = vsel %vm806_vm4, %v1693_v11, %v1694_v10 }
 0x706   : > { %v1586_v15 = vpack.c.bf16 %v1171_v13, %v1159_v7  ;;  %v1697_v16 = vpop.permute.xlu1 %1696  ;;  %v1584_v17 = vpack.c.bf16 %v1172_v14, %v1160_v2 }
 0x707   : > { %v1699_v18 = vunpack.i.h.bf16 %v1697_v16  ;;  %v1698_v19 = vunpack.i.l.bf16 %v1697_v16 }
 0x708   : > { %1585 = vmatprep.subr.bf16.mxu0 %v1584_v17  ;;  %v1702_v20 = vpop.permute.xlu0 %1701 }
 0x709   : > { %v1704_v21 = vunpack.i.h.bf16 %v1702_v20  ;;  %v1703_v23 = vunpack.i.l.bf16 %v1702_v20  ;;  %1587 = vmatpush1.bf16.msra.mxu0 %v1586_v15  ;;  %v1183_v25 = vsel %vm1181_vm5, %v1698_v19, %v1699_v18 }
 0x70a   : > { %v1176_v24 = vpop.permute.xlu1 %1175 }
 0x70b   : > { %v1194_v26 = vsel %vm1192_vm6, %v1703_v23, %v1704_v21  ;;  %v1182_v29 = vsel %vm1181_vm5, %v1176_v24, %v1698_v19 }
 0x70c   : > { %v1187_v27 = vpop.permute.xlu0 %1186  ;;  %v1588_v28 = vpack.c.bf16 %v1194_v26, %v1183_v25 }
 0x70d   : > { %v1193_v30 = vsel %vm1192_vm6, %v1187_v27, %v1703_v23 }
 0x70e   : > { %v1590_v31 = vpack.c.bf16 %v1193_v30, %v1182_v29  ;;  %v1707_v32 = vpop.permute.xlu1 %1706  ;;  %1589 = vmatprep.subr.bf16.mxu0 %v1588_v28  ;;  %v1296_v28 = vld [vmem:[%s2128_s9] sm:$0x1f] }
 0x70f   : > { %v1709_v33 = vunpack.i.h.bf16 %v1707_v32  ;;  %v1708_v34 = vunpack.i.l.bf16 %v1707_v32 }
 0x710   : > { %v1712_v22 = vpop.permute.xlu0 %1711  ;;  %1591 = vmatpush1.bf16.msra.mxu0 %v1590_v31 }
 0x711   : > { %v1714_v35 = vunpack.i.h.bf16 %v1712_v22  ;;  %v1713_v36 = vunpack.i.l.bf16 %v1712_v22  ;;  %v1205_v38 = vsel %vm1203_vm7, %v1708_v34, %v1709_v33 }
 0x712   : > { %v1198_v37 = vpop.permute.xlu1 %1197 }
 0x713   : > { %v1216_v39 = vsel %vm1214_vm8, %v1713_v36, %v1714_v35  ;;  %v1204_v42 = vsel %vm1203_vm7, %v1198_v37, %v1708_v34 }
 0x714   : > { %v1209_v40 = vpop.permute.xlu0 %1208  ;;  %v1592_v41 = vpack.c.bf16 %v1216_v39, %v1205_v38 }
 0x715   : > { %v1215_v43 = vsel %vm1214_vm8, %v1209_v40, %v1713_v36 }
 0x716   : > { %v1594_v44 = vpack.c.bf16 %v1215_v43, %v1204_v42  ;;  %v1717_v45 = vpop.permute.xlu1 %1716  ;;  %1593 = vmatprep.subr.bf16.mxu0 %v1592_v41 }
 0x717   : > { %v1719_v46 = vunpack.i.h.bf16 %v1717_v45  ;;  %v1718_v47 = vunpack.i.l.bf16 %v1717_v45 }
 0x718   : > { %v1722_v48 = vpop.permute.xlu0 %1721  ;;  %1595 = vmatpush1.bf16.msra.mxu0 %v1594_v44 }
 0x719   : > { %v1724_v49 = vunpack.i.h.bf16 %v1722_v48  ;;  %v1723_v50 = vunpack.i.l.bf16 %v1722_v48  ;;  %v1227_v52 = vsel %vm1225_vm9, %v1718_v47, %v1719_v46 }
 0x71a   : > { %v1220_v51 = vpop.permute.xlu1 %1219 }
 0x71b   : > { %v1238_v53 = vsel %vm1236_vm10, %v1723_v50, %v1724_v49  ;;  %v1226_v56 = vsel %vm1225_vm9, %v1220_v51, %v1718_v47 }
 0x71c   : > { %v1231_v54 = vpop.permute.xlu0 %1230  ;;  %v1596_v55 = vpack.c.bf16 %v1238_v53, %v1227_v52 }
 0x71d   : > { %v1237_v57 = vsel %vm1236_vm10, %v1231_v54, %v1723_v50 }
 0x71e   : > { %v1598_v58 = vpack.c.bf16 %v1237_v57, %v1226_v56  ;;  %v1727_v59 = vpop.permute.xlu1 %1726  ;;  %1597 = vmatprep.subr.bf16.mxu0 %v1596_v55 }
 0x71f   : > { %v1729_v60 = vunpack.i.h.bf16 %v1727_v59  ;;  %v1728_v61 = vunpack.i.l.bf16 %v1727_v59 }
 0x720   : > { %v1732_v62 = vpop.permute.xlu0 %1731  ;;  %1599 = vmatpush1.bf16.msra.mxu0 %v1598_v58 }
 0x721   : > { %v1734_v63 = vunpack.i.h.bf16 %v1732_v62  ;;  %v1733_v0 = vunpack.i.l.bf16 %v1732_v62  ;;  %v1249_v1 = vsel %vm1247_vm11, %v1728_v61, %v1729_v60 }
 0x722   : > { %v1242_v3 = vpop.permute.xlu1 %1241 }
 0x723   : > { %v1260_v2 = vsel %vm1258_vm12, %v1733_v0, %v1734_v63  ;;  %v1248_v6 = vsel %vm1247_vm11, %v1242_v3, %v1728_v61 }
 0x724   : > { %v1253_v4 = vpop.permute.xlu0 %1252  ;;  %v1600_v5 = vpack.c.bf16 %v1260_v2, %v1249_v1 }
 0x725   : > { %v1259_v7 = vsel %vm1258_vm12, %v1253_v4, %v1733_v0 }
 0x726   : > { %v1602_v8 = vpack.c.bf16 %v1259_v7, %v1248_v6  ;;  %v1737_v9 = vpop.permute.xlu1 %1736  ;;  %1601 = vmatprep.subr.bf16.mxu0 %v1600_v5 }
 0x727   : > { %v1739_v10 = vunpack.i.h.bf16 %v1737_v9  ;;  %v1738_v11 = vunpack.i.l.bf16 %v1737_v9 }
 0x728   : > { %v1742_v12 = vpop.permute.xlu0 %1741  ;;  %1603 = vmatpush1.bf16.msra.mxu0 %v1602_v8 }
 0x729   : > { %v1744_v13 = vunpack.i.h.bf16 %v1742_v12  ;;  %v1743_v14 = vunpack.i.l.bf16 %v1742_v12  ;;  %v1271_v16 = vsel %vm1269_vm13, %v1738_v11, %v1739_v10 }
 0x72a   : > { %v1264_v15 = vpop.permute.xlu1 %1263 }
 0x72b   : > { %v1282_v17 = vsel %vm1280_vm14, %v1743_v14, %v1744_v13  ;;  %v1270_v20 = vsel %vm1269_vm13, %v1264_v15, %v1738_v11 }
 0x72c   : > { %v1275_v18 = vpop.permute.xlu0 %1274  ;;  %v1604_v19 = vpack.c.bf16 %v1282_v17, %v1271_v16 }
 0x72d   : > { %v1281_v21 = vsel %vm1280_vm14, %v1275_v18, %v1743_v14 }
 0x72e   : > { %v1606_v23 = vpack.c.bf16 %v1281_v21, %v1270_v20  ;;  %v1288_v24 = vpop.permute.xlu1 %1287  ;;  %1605 = vmatprep.subr.bf16.mxu0 %v1604_v19 }
 0x730   : > { %v1290_v25 = vpop.permute.xlu0 %1289  ;;  %1607 = vmatpush1.bf16.msra.mxu0 %v1606_v23 }
 0x731   : > { %v1293_v26 = vsel %vm1291_vm15, %v1288_v24, %v1290_v25 }
 0x732   : > { %v1286_v27 = vpop.permute.xlu1 %1285  ;;  %1330 = vmatprep.subr.mxu0 %v1293_v26 }
 0x733   : > { %v1292_v29 = vsel %vm1291_vm15, %v1286_v27, %v1288_v24 }
 0x734   : > { %1331 = vmatpush1.msra.mxu0 %v1292_v29 }
 0x735   : > { %1500 = vmatmul.mubr.msk.f32.vlgmr.msra.gmra.mrb[4].mxu0 %vm1225_vm9, %v1296_v28 }
 0x741   : > { %v1301_v30 = vpop.permute.xlu0 %1300 }
 0x808   : > { %v1372_v31 = vpop.f32.mrb[4].mxu0 }
 0x809   : > { %v1373_v32 = vadd.f32 %v1372_v31, %v1301_v30  ;;  %v1374_v33 = vpop.f32.mrb[5].mxu0 }
 0x80a   : > { %v1375_v34 = vadd.f32 %v1374_v33, %v1301_v30 }
 0x80b   : > { %v1378_v22 = vsel %vm1377_vm0, %v1373_v32, -inf }
 0x80c   : > { %v1379_v35 = vrot.slane %v1378_v22, 4  ;;  %v1385_v36 = vsel %vm1377_vm0, %v1375_v34, -inf }
 0x80d   : > { %v1386_v37 = vrot.slane %v1385_v36, 4 }
 0x80e   : > { %v1380_v38 = vmax.f32 %v1378_v22, %v1379_v35 }
 0x80f   : > { %v1387_v39 = vmax.f32 %v1385_v36, %v1386_v37 }
 0x810   : > { %v1381_v40 = vrot.slane %v1380_v38, 2 }
 0x811   : > { %v1388_v41 = vrot.slane %v1387_v39, 2 }
 0x812   : > { %v1382_v42 = vmax.f32 %v1380_v38, %v1381_v40 }
 0x813   : > { %v1389_v43 = vmax.f32 %v1387_v39, %v1388_v41 }
 0x814   : > { %v1383_v44 = vrot.slane %v1382_v42, 1 }
 0x815   : > { %v1390_v45 = vrot.slane %v1389_v43, 1 }
 0x816   : > { %v1384_v46 = vmax.f32 %v1382_v42, %v1383_v44 }
 0x817   : > { %v1391_v47 = vmax.f32 %v1389_v43, %v1390_v45 }
 0x818   : > { %v1392_v48 = vsub.f32 %v1373_v32, %v1384_v46 }
 0x819   : > { %v1393_v49 = vsub.f32 %v1375_v34, %v1391_v47 }
 0x81a   : > { %v1394_v50 = vmul.f32 1.442695, %v1392_v48 }
 0x81b   : > { %v1396_v51 = vmul.f32 1.442695, %v1393_v49 }
 0x81c   : > { %1745 = vpow2.f32 %v1394_v50 }
 0x81d   : > { %1747 = vpow2.f32 %v1396_v51 }
 0x826   : > { %v1746_v52 = vpop.eup %1745 }
 0x827   : > { %v1748_v53 = vpop.eup %1747  ;;  %v1398_v54 = vsel %vm1377_vm0, %v1746_v52, 0.0 }
 0x828   : > { %v1399_v55 = vrot.slane %v1398_v54, 4  ;;  %v1405_v56 = vsel %vm1377_vm0, %v1748_v53, 0.0 }
 0x829   : > { %v1406_v57 = vrot.slane %v1405_v56, 4 }
 0x82a   : > { %v1400_v58 = vadd.f32 %v1399_v55, %v1398_v54 }
 0x82b   : > { %v1407_v59 = vadd.f32 %v1406_v57, %v1405_v56 }
 0x82c   : > { %v1401_v60 = vrot.slane %v1400_v58, 2 }
 0x82d   : > { %v1408_v61 = vrot.slane %v1407_v59, 2 }
 0x82e   : > { %v1402_v62 = vadd.f32 %v1401_v60, %v1400_v58 }
 0x82f   : > { %v1409_v63 = vadd.f32 %v1408_v61, %v1407_v59 }
 0x830   : > { %v1403_v0 = vrot.slane %v1402_v62, 1 }
 0x831   : > { %v1410_v3 = vrot.slane %v1409_v63, 1 }
 0x832   : > { %v1404_v1 = vadd.f32 %v1403_v0, %v1402_v62 }
 0x833   : > { %v1411_v2 = vadd.f32 %v1410_v3, %v1409_v63 }
 0x834   : > { %1749 = vrcp.f32 %v1404_v1 }
 0x835   : > { %1751 = vrcp.f32 %v1411_v2 }
 0x83e   : > { %v1750_v4 = vpop.eup %1749 }
 0x83f   : > { %v1752_v5 = vpop.eup %1751  ;;  %v1413_v6 = vmul.f32 %v1750_v4, %v1746_v52 }
 0x840   : > { %v1415_v7 = vmul.f32 %v1752_v5, %v1748_v53 }
 0x841   : > { %1416 = vst [vmem:[%s404_s27] sm:$0x1f] %v1413_v6 }
 0x842   : > { %1417 = vst [vmem:[%s404_s27 + $0x8] sm:$0x1f] %v1415_v7 }
 0x843 PF: > { %s2135_s28 = sld [smem:[#allocation5_spill]]  ;;  %p21_p8 = scmp.ge.s32.totalorder %s1920_s22, 4  }
 0x844   : > { %s2136_s17 = smov %s1809_s18  ;;  %s2137_s18 = smov %s1813_s19 }
 0x845   : > { %s2139_s20 = smov %s1920_s22  ;;  %23 = sbr.rel (!%p21_p8) target bundleno = 3 (0x3), region = 104 }
 0x849   : > { %s2138_s19 = smov %s2135_s28 }
 0x84c   :  { %1439 = vsyncpa [#allocation3], 1 }
 0x84d   :  { %1441 = vsyncpa [#allocation3 + $0x1], 1 }

</bundles_post_ra>
